<compile_context>
chip_gen: v7x
topology: tpu7x:2x2x1
jax: 0.10.0
libtpu: 0.0.40
codegen_flags: <defaults>
</compile_context>

<pallas_src>
import functools

import jax
import jax.numpy as jnp
from jax.experimental import pallas as pl
from jax.experimental.pallas import tpu as pltpu


def _leaky_relu(v, slope=0.01):
    return jnp.where(v > 0, v, slope * v)


def _round_up(n, m):
    return (n + m - 1) // m * m


def adapter_kernel(x_ref, wd_ref, bd_ref, wu_ref, bu_ref, wf_ref, bf_ref,
                   o_ref, u_ref, *, residual=True):
    """Grid = (token_tiles, N_tiles of final_proj)."""
    j = pl.program_id(1)

    @pl.when(j == 0)
    def _():
        x = x_ref[...].astype(jnp.float32)
        xb = x.astype(jnp.bfloat16)
        # down_proj + LeakyReLU   (bf16 operands, f32 accumulation on the MXU)
        h = jnp.dot(xb, wd_ref[...], preferred_element_type=jnp.float32)
        h = _leaky_relu(h + bd_ref[...])
        # up_proj + LeakyReLU
        u = jnp.dot(h.astype(jnp.bfloat16), wu_ref[...],
                    preferred_element_type=jnp.float32)
        u = _leaky_relu(u + bu_ref[...])
        if residual:
            u = u + x
        u_ref[...] = u.astype(jnp.bfloat16)

    # final_proj on the current N tile (reads the cached bf16 activations)
    out = jnp.dot(u_ref[...], wf_ref[...], preferred_element_type=jnp.float32)
    o_ref[...] = (out + bf_ref[...]).astype(o_ref.dtype)


def _build_call(*, n_pad, in_p, bot_p, out_p, tile_tokens, tn, out_dtype,
                residual, flops, bytes_accessed, vmem_limit,
                single_buffer_weights):
    grid = (n_pad // tile_tokens, out_p // tn)

    def const_spec(shape):
        # Weights whose block index never changes: a single VMEM buffer suffices.
        if single_buffer_weights:
            return pl.BlockSpec(shape, lambda i, j: (0, 0),
                                pipeline_mode=pl.Buffered(1))
        return pl.BlockSpec(shape, lambda i, j: (0, 0))

    if single_buffer_weights and tn == out_p:
        # final_proj weight fully resident -> also effectively constant.
        wf_spec = pl.BlockSpec((in_p, tn), lambda i, j: (0, j),
                               pipeline_mode=pl.Buffered(1))
        bf_spec = pl.BlockSpec((1, tn), lambda i, j: (0, j),
                               pipeline_mode=pl.Buffered(1))
    else:
        wf_spec = pl.BlockSpec((in_p, tn), lambda i, j: (0, j))
        bf_spec = pl.BlockSpec((1, tn), lambda i, j: (0, j))

    in_specs = [
        pl.BlockSpec((tile_tokens, in_p), lambda i, j: (i, 0)),   # x
        const_spec((in_p, bot_p)),                                # wd (bf16)
        const_spec((1, bot_p)),                                   # bd (f32)
        const_spec((bot_p, in_p)),                                # wu (bf16)
        const_spec((1, in_p)),                                    # bu (f32)
        wf_spec,                                                  # wf (bf16)
        bf_spec,                                                  # bf (f32)
    ]
    out_specs = pl.BlockSpec((tile_tokens, tn), lambda i, j: (i, j))

    return pl.pallas_call(
        functools.partial(adapter_kernel, residual=residual),
        out_shape=jax.ShapeDtypeStruct((n_pad, out_p), out_dtype),
        grid_spec=pltpu.PrefetchScalarGridSpec(
            num_scalar_prefetch=0,
            grid=grid,
            in_specs=in_specs,
            out_specs=out_specs,
            # bf16 cache of (act(up(act(down(x)))) [+ x]) reused across the N sweep
            scratch_shapes=[pltpu.VMEM((tile_tokens, in_p), jnp.bfloat16)],
        ),
        compiler_params=pltpu.CompilerParams(
            dimension_semantics=("parallel", "arbitrary"),
            vmem_limit_bytes=int(vmem_limit),
        ),
        cost_estimate=pl.CostEstimate(
            flops=int(flops), transcendentals=0,
            bytes_accessed=int(bytes_accessed)),
    )


def adapter_forward(x, params, *, residual=True, tile_tokens=256):
    """x: [..., input_dim] -> [..., output_dim]"""
    wd, bd, wu, bu, wf, bf = (
        params["wd"], params["bd"], params["wu"], params["bu"],
        params["wf"], params["bf"],
    )
    in_dim, bot_dim = wd.shape
    out_dim = wf.shape[1]
    assert x.shape[-1] == in_dim

    orig_shape = x.shape
    x2d = x.reshape(-1, in_dim)
    n_tok = x2d.shape[0]
    x_item = jnp.dtype(x.dtype).itemsize

    # Lane-dense padding: every feature dim to a multiple of 128. Zero padding is
    # exact (padded features stay 0 through both LeakyReLUs and the residual).
    in_p = _round_up(in_dim, 128)
    bot_p = _round_up(bot_dim, 128)
    out_p = _round_up(out_dim, 128)

    # Token tile: large M for the MXU, multiple of 16 (bf16 sublane tile), never
    # larger than the (padded) token count.
    tile_tokens = max(16, min(int(tile_tokens), _round_up(n_tok, 16)))
    n_pad = _round_up(n_tok, tile_tokens)

    # VMEM budget (per-core).
    try:
        vmem_cap = int(pltpu.get_tpu_info().vmem_capacity_bytes)
    except Exception:
        vmem_cap = 64 * 2**20  # conservative: v7x per-core VMEM
    budget = int(0.7 * vmem_cap)

    def vmem_need(tn, single_buffer):
        wbuf = 1 if single_buffer else 2
        wfbuf = 1 if (single_buffer and tn == out_p) else 2
        return (2 * tile_tokens * in_p * x_item                    # x tiles (dbl-buf)
                + wbuf * (in_p * bot_p + bot_p * in_p) * 2         # wd, wu (bf16)
                + wfbuf * in_p * tn * 2                            # wf tile (bf16)
                + 2 * tile_tokens * tn * x_item                    # out tile (dbl-buf)
                + tile_tokens * in_p * 2                           # bf16 cache
                + wbuf * (bot_p + in_p) * 4 + wfbuf * tn * 4)      # biases

    # Largest final_proj N-tile that fits the budget. tn == out_p keeps wf fully
    # resident (single HBM fetch) instead of re-streaming it every token tile.
    nj = 1
    while True:
        tn = _round_up(-(-out_p // nj), 128)
        if vmem_need(tn, True) <= budget or tn == 128:
            break
        nj += 1
    out_pp = nj * tn  # output feature dim padded to a tile multiple

    f32, bf16 = jnp.float32, jnp.bfloat16
    xp = jnp.pad(x2d, ((0, n_pad - n_tok), (0, in_p - in_dim)))
    wdp = jnp.pad(wd, ((0, in_p - in_dim), (0, bot_p - bot_dim))).astype(bf16)
    wup = jnp.pad(wu, ((0, bot_p - bot_dim), (0, in_p - in_dim))).astype(bf16)
    wfp = jnp.pad(wf, ((0, in_p - in_dim), (0, out_pp - out_dim))).astype(bf16)
    bdp = jnp.pad(bd, (0, bot_p - bot_dim)).reshape(1, -1).astype(f32)
    bup = jnp.pad(bu, (0, in_p - in_dim)).reshape(1, -1).astype(f32)
    bfp = jnp.pad(bf, (0, out_pp - out_dim)).reshape(1, -1).astype(f32)

    flops = 2 * n_pad * (in_p * bot_p + bot_p * in_p + in_p * out_pp)
    bytes_accessed = (xp.size * xp.dtype.itemsize
                      + (wdp.size + wup.size + wfp.size) * 2
                      + (bdp.size + bup.size + bfp.size) * 4
                      + n_pad * out_pp * x_item)
    need = vmem_need(tn, True)
    vmem_limit = int(min(max(2 * need, 32 * 2**20), int(0.9 * vmem_cap)))

    common = dict(n_pad=n_pad, in_p=in_p, bot_p=bot_p, out_p=out_pp,
                  tile_tokens=tile_tokens, tn=tn, out_dtype=x.dtype,
                  residual=residual, flops=flops, bytes_accessed=bytes_accessed,
                  vmem_limit=vmem_limit)
    args = (xp, wdp, bdp, wup, bup, wfp, bfp)
    try:
        out = _build_call(single_buffer_weights=True, **common)(*args)
    except Exception:
        # Fallback if this jax build rejects pipeline_mode=pl.Buffered on BlockSpec.
        out = _build_call(single_buffer_weights=False, **common)(*args)

    out = out[:n_tok, :out_dim]
    return out.reshape(*orig_shape[:-1], out_dim)


def init_adapter_params(key, input_dim, bottleneck_dim, output_dim, dtype=jnp.float32):
    ks = jax.random.split(key, 6)

    def lin(kw, kb, fan_in, fan_out):
        bound = 1.0 / jnp.sqrt(fan_in)
        w = jax.random.uniform(kw, (fan_in, fan_out), dtype, -bound, bound)
        b = jax.random.uniform(kb, (fan_out,), dtype, -bound, bound)
        return w, b

    wd, bd = lin(ks[0], ks[1], input_dim, bottleneck_dim)
    wu, bu = lin(ks[2], ks[3], bottleneck_dim, input_dim)
    wf, bf = lin(ks[4], ks[5], input_dim, output_dim)
    return {"wd": wd, "bd": bd, "wu": wu, "bu": bu, "wf": wf, "bf": bf}


def adapter_reference(x, params, *, residual=True, match_kernel_precision=True):
    """Plain-JAX reference. With match_kernel_precision=True it uses the same
    bf16-operand / f32-accumulate matmuls as the kernel."""
    cast = (lambda a: a.astype(jnp.bfloat16)) if match_kernel_precision else (lambda a: a)

    def mm(a, w):
        return jnp.dot(cast(a), cast(w), preferred_element_type=jnp.float32)

    x32 = x.astype(jnp.float32)
    h = _leaky_relu(mm(x32, params["wd"]) + params["bd"])
    u = _leaky_relu(mm(h, params["wu"]) + params["bu"])
    if residual:
        u = u + x32
    return (mm(u, params["wf"]) + params["bf"]).astype(x.dtype)


if __name__ == "__main__":
    key = jax.random.PRNGKey(0)
    k_param, k_x = jax.random.split(key)

    # small shapes: batch=2, seq=8, input_dim=32, bottleneck_dim=64, output_dim=48
    batch, seq, input_dim = 2, 8, 32
    bottleneck_dim, output_dim = 64, 48

    params = init_adapter_params(k_param, input_dim, bottleneck_dim, output_dim)
    x = jax.random.normal(k_x, (batch, seq, input_dim), jnp.float32)

    out = adapter_forward(x, params)
    out = jax.block_until_ready(out)

    ref = adapter_reference(x.reshape(-1, input_dim), params)
    ref = ref.reshape(batch, seq, output_dim)

    assert out.shape == (batch, seq, output_dim)
    err = float(jnp.max(jnp.abs(out.astype(jnp.float32) - ref.astype(jnp.float32))))
    assert err < 2e-2, err

    print("KERNEL_OK")
</pallas_src>

<mosaic_0001>
module attributes {stable_mosaic.version = 11 : i64} {
  func.func @adapter_kernel(%arg0: i32, %arg1: i32, %arg2: memref<16x128xf32, #tpu.memory_space<vmem>>, %arg3: memref<128x128xbf16, #tpu.memory_space<vmem>>, %arg4: memref<1x128xf32, #tpu.memory_space<vmem>>, %arg5: memref<128x128xbf16, #tpu.memory_space<vmem>>, %arg6: memref<1x128xf32, #tpu.memory_space<vmem>>, %arg7: memref<128x128xbf16, #tpu.memory_space<vmem>>, %arg8: memref<1x128xf32, #tpu.memory_space<vmem>>, %arg9: memref<16x128xf32, #tpu.memory_space<vmem>>, %arg10: memref<16x128xbf16, #tpu.memory_space<vmem>>) attributes {dimension_semantics = [#tpu.dimension_semantics<parallel>, #tpu.dimension_semantics<arbitrary>], iteration_bounds = array<i64: 1, 1>, scalar_prefetch = 0 : i64, scratch_operands = 1 : i64, tpu.core_type = #tpu.core_type<tc>, window_params = [{transform_indices = @transform_0, window_bounds = array<i64: 16, 128>}, {pipeline_mode = #tpu.pipeline_mode<synchronous>, transform_indices = @transform_1, window_bounds = array<i64: 128, 128>}, {pipeline_mode = #tpu.pipeline_mode<synchronous>, transform_indices = @transform_2, window_bounds = array<i64: 1, 128>}, {pipeline_mode = #tpu.pipeline_mode<synchronous>, transform_indices = @transform_3, window_bounds = array<i64: 128, 128>}, {pipeline_mode = #tpu.pipeline_mode<synchronous>, transform_indices = @transform_4, window_bounds = array<i64: 1, 128>}, {pipeline_mode = #tpu.pipeline_mode<synchronous>, transform_indices = @transform_5, window_bounds = array<i64: 128, 128>}, {pipeline_mode = #tpu.pipeline_mode<synchronous>, transform_indices = @transform_6, window_bounds = array<i64: 1, 128>}, {transform_indices = @transform_7, window_bounds = array<i64: 16, 128>}]} {
    %c0_i32 = arith.constant 0 : i32
    %0 = arith.cmpi eq, %arg1, %c0_i32 : i32
    %1 = arith.extui %0 : i1 to i32
    %c0_i32_0 = arith.constant 0 : i32
    %2 = arith.cmpi ne, %1, %c0_i32_0 : i32
    scf.if %2 {
      %c0_8 = arith.constant 0 : index
      %c0_9 = arith.constant 0 : index
      %10 = vector.load %arg2[%c0_8, %c0_9] : memref<16x128xf32, #tpu.memory_space<vmem>>, vector<16x128xf32>
      %11 = arith.truncf %10 : vector<16x128xf32> to vector<16x128xbf16>
      %c0_10 = arith.constant 0 : index
      %c0_11 = arith.constant 0 : index
      %12 = vector.load %arg3[%c0_10, %c0_11] : memref<128x128xbf16, #tpu.memory_space<vmem>>, vector<128x128xbf16>
      %cst_12 = arith.constant dense<0.000000e+00> : vector<16x128xf32>
      %13 = tpu.matmul %11, %12, %cst_12 {dimension_numbers = #tpu.dot_dimension_numbers<[1], [0], [0], [1], [0, 0, 1, 1], [], []>} : vector<16x128xbf16>, vector<128x128xbf16>, vector<16x128xf32> -> vector<16x128xf32>
      %c0_13 = arith.constant 0 : index
      %c0_14 = arith.constant 0 : index
      %14 = vector.load %arg4[%c0_13, %c0_14] : memref<1x128xf32, #tpu.memory_space<vmem>>, vector<1x128xf32>
      %15 = vector.broadcast %14 : vector<1x128xf32> to vector<16x128xf32>
      %16 = arith.addf %13, %15 : vector<16x128xf32>
      %cst_15 = arith.constant 0.000000e+00 : f32
      %17 = vector.broadcast %cst_15 : f32 to vector<16x128xf32>
      %18 = arith.cmpf ogt, %16, %17 : vector<16x128xf32>
      %cst_16 = arith.constant 0.00999999977 : f32
      %19 = vector.broadcast %cst_16 : f32 to vector<16x128xf32>
      %20 = arith.mulf %19, %16 : vector<16x128xf32>
      %21 = arith.select %18, %16, %20 : vector<16x128xi1>, vector<16x128xf32>
      %22 = arith.truncf %21 : vector<16x128xf32> to vector<16x128xbf16>
      %c0_17 = arith.constant 0 : index
      %c0_18 = arith.constant 0 : index
      %23 = vector.load %arg5[%c0_17, %c0_18] : memref<128x128xbf16, #tpu.memory_space<vmem>>, vector<128x128xbf16>
      %cst_19 = arith.constant dense<0.000000e+00> : vector<16x128xf32>
      %24 = tpu.matmul %22, %23, %cst_19 {dimension_numbers = #tpu.dot_dimension_numbers<[1], [0], [0], [1], [0, 0, 1, 1], [], []>} : vector<16x128xbf16>, vector<128x128xbf16>, vector<16x128xf32> -> vector<16x128xf32>
      %c0_20 = arith.constant 0 : index
      %c0_21 = arith.constant 0 : index
      %25 = vector.load %arg6[%c0_20, %c0_21] : memref<1x128xf32, #tpu.memory_space<vmem>>, vector<1x128xf32>
      %26 = vector.broadcast %25 : vector<1x128xf32> to vector<16x128xf32>
      %27 = arith.addf %24, %26 : vector<16x128xf32>
      %cst_22 = arith.constant 0.000000e+00 : f32
      %28 = vector.broadcast %cst_22 : f32 to vector<16x128xf32>
      %29 = arith.cmpf ogt, %27, %28 : vector<16x128xf32>
      %cst_23 = arith.constant 0.00999999977 : f32
      %30 = vector.broadcast %cst_23 : f32 to vector<16x128xf32>
      %31 = arith.mulf %30, %27 : vector<16x128xf32>
      %32 = arith.select %29, %27, %31 : vector<16x128xi1>, vector<16x128xf32>
      %33 = arith.addf %32, %10 : vector<16x128xf32>
      %34 = arith.truncf %33 : vector<16x128xf32> to vector<16x128xbf16>
      %c0_24 = arith.constant 0 : index
      %c0_25 = arith.constant 0 : index
      %35 = vector.load %arg10[%c0_24, %c0_25] : memref<16x128xbf16, #tpu.memory_space<vmem>>, vector<16x128xbf16>
      tpu.vector_store %arg10[%c0_24, %c0_25], %34 {strides = array<i32>} : memref<16x128xbf16, #tpu.memory_space<vmem>>, vector<16x128xbf16>,
    } else {
    }
    %c0 = arith.constant 0 : index
    %c0_1 = arith.constant 0 : index
    %3 = vector.load %arg10[%c0, %c0_1] : memref<16x128xbf16, #tpu.memory_space<vmem>>, vector<16x128xbf16>
    %c0_2 = arith.constant 0 : index
    %c0_3 = arith.constant 0 : index
    %4 = vector.load %arg7[%c0_2, %c0_3] : memref<128x128xbf16, #tpu.memory_space<vmem>>, vector<128x128xbf16>
    %cst = arith.constant dense<0.000000e+00> : vector<16x128xf32>
    %5 = tpu.matmul %3, %4, %cst {dimension_numbers = #tpu.dot_dimension_numbers<[1], [0], [0], [1], [0, 0, 1, 1], [], []>} : vector<16x128xbf16>, vector<128x128xbf16>, vector<16x128xf32> -> vector<16x128xf32>
    %c0_4 = arith.constant 0 : index
    %c0_5 = arith.constant 0 : index
    %6 = vector.load %arg8[%c0_4, %c0_5] : memref<1x128xf32, #tpu.memory_space<vmem>>, vector<1x128xf32>
    %7 = vector.broadcast %6 : vector<1x128xf32> to vector<16x128xf32>
    %8 = arith.addf %5, %7 : vector<16x128xf32>
    %c0_6 = arith.constant 0 : index
    %c0_7 = arith.constant 0 : index
    %9 = vector.load %arg9[%c0_6, %c0_7] : memref<16x128xf32, #tpu.memory_space<vmem>>, vector<16x128xf32>
    tpu.vector_store %arg9[%c0_6, %c0_7], %8 {strides = array<i32>} : memref<16x128xf32, #tpu.memory_space<vmem>>, vector<16x128xf32>,
    return
  }
  func.func @transform_0(%arg0: i32, %arg1: i32) -> (i32, i32) {
    %c0_i32 = arith.constant 0 : i32
    %c0_i32_0 = arith.constant 0 : i32
    return %arg0, %c0_i32 : i32, i32
  }
  func.func @transform_1(%arg0: i32, %arg1: i32) -> (i32, i32) {
    %c0_i32 = arith.constant 0 : i32
    %c0_i32_0 = arith.constant 0 : i32
    %c0_i32_1 = arith.constant 0 : i32
    return %c0_i32, %c0_i32_0 : i32, i32
  }
  func.func @transform_2(%arg0: i32, %arg1: i32) -> (i32, i32) {
    %c0_i32 = arith.constant 0 : i32
    %c0_i32_0 = arith.constant 0 : i32
    %c0_i32_1 = arith.constant 0 : i32
    return %c0_i32, %c0_i32_0 : i32, i32
  }
  func.func @transform_3(%arg0: i32, %arg1: i32) -> (i32, i32) {
    %c0_i32 = arith.constant 0 : i32
    %c0_i32_0 = arith.constant 0 : i32
    %c0_i32_1 = arith.constant 0 : i32
    return %c0_i32, %c0_i32_0 : i32, i32
  }
  func.func @transform_4(%arg0: i32, %arg1: i32) -> (i32, i32) {
    %c0_i32 = arith.constant 0 : i32
    %c0_i32_0 = arith.constant 0 : i32
    %c0_i32_1 = arith.constant 0 : i32
    return %c0_i32, %c0_i32_0 : i32, i32
  }
  func.func @transform_5(%arg0: i32, %arg1: i32) -> (i32, i32) {
    %c0_i32 = arith.constant 0 : i32
    %c0_i32_0 = arith.constant 0 : i32
    return %c0_i32, %arg1 : i32, i32
  }
  func.func @transform_6(%arg0: i32, %arg1: i32) -> (i32, i32) {
    %c0_i32 = arith.constant 0 : i32
    %c0_i32_0 = arith.constant 0 : i32
    return %c0_i32, %arg1 : i32, i32
  }
  func.func @transform_7(%arg0: i32, %arg1: i32) -> (i32, i32) {
    %c0_i32 = arith.constant 0 : i32
    return %arg0, %arg1 : i32, i32
  }
}

module attributes {stable_mosaic.version = 11 : i64} {
  func.func @adapter_kernel(%arg0: i32, %arg1: i32, %arg2: memref<16x128xf32, #tpu.memory_space<vmem>>, %arg3: memref<128x128xbf16, #tpu.memory_space<vmem>>, %arg4: memref<1x128xf32, #tpu.memory_space<vmem>>, %arg5: memref<128x128xbf16, #tpu.memory_space<vmem>>, %arg6: memref<1x128xf32, #tpu.memory_space<vmem>>, %arg7: memref<128x128xbf16, #tpu.memory_space<vmem>>, %arg8: memref<1x128xf32, #tpu.memory_space<vmem>>, %arg9: memref<16x128xf32, #tpu.memory_space<vmem>>, %arg10: memref<16x128xbf16, #tpu.memory_space<vmem>>) attributes {dimension_semantics = [#tpu.dimension_semantics<parallel>, #tpu.dimension_semantics<arbitrary>], iteration_bounds = array<i64: 1, 1>, scalar_prefetch = 0 : i64, scratch_operands = 1 : i64, tpu.core_type = #tpu.core_type<tc>, window_params = [{transform_indices = @transform_0, window_bounds = array<i64: 16, 128>}, {pipeline_mode = #tpu.pipeline_mode<synchronous>, transform_indices = @transform_1, window_bounds = array<i64: 128, 128>}, {pipeline_mode = #tpu.pipeline_mode<synchronous>, transform_indices = @transform_2, window_bounds = array<i64: 1, 128>}, {pipeline_mode = #tpu.pipeline_mode<synchronous>, transform_indices = @transform_3, window_bounds = array<i64: 128, 128>}, {pipeline_mode = #tpu.pipeline_mode<synchronous>, transform_indices = @transform_4, window_bounds = array<i64: 1, 128>}, {transform_indices = @transform_5, window_bounds = array<i64: 128, 128>}, {transform_indices = @transform_6, window_bounds = array<i64: 1, 128>}, {transform_indices = @transform_7, window_bounds = array<i64: 16, 128>}]} {
    %c0_i32 = arith.constant 0 : i32
    %0 = arith.cmpi eq, %arg1, %c0_i32 : i32
    %1 = arith.extui %0 : i1 to i32
    %c0_i32_0 = arith.constant 0 : i32
    %2 = arith.cmpi ne, %1, %c0_i32_0 : i32
    scf.if %2 {
      %c0_8 = arith.constant 0 : index
      %c0_9 = arith.constant 0 : index
      %10 = vector.load %arg2[%c0_8, %c0_9] : memref<16x128xf32, #tpu.memory_space<vmem>>, vector<16x128xf32>
      %11 = arith.truncf %10 : vector<16x128xf32> to vector<16x128xbf16>
      %c0_10 = arith.constant 0 : index
      %c0_11 = arith.constant 0 : index
      %12 = vector.load %arg3[%c0_10, %c0_11] : memref<128x128xbf16, #tpu.memory_space<vmem>>, vector<128x128xbf16>
      %cst_12 = arith.constant dense<0.000000e+00> : vector<16x128xf32>
      %13 = tpu.matmul %11, %12, %cst_12 {dimension_numbers = #tpu.dot_dimension_numbers<[1], [0], [0], [1], [0, 0, 1, 1], [], []>} : vector<16x128xbf16>, vector<128x128xbf16>, vector<16x128xf32> -> vector<16x128xf32>
      %c0_13 = arith.constant 0 : index
      %c0_14 = arith.constant 0 : index
      %14 = vector.load %arg4[%c0_13, %c0_14] : memref<1x128xf32, #tpu.memory_space<vmem>>, vector<1x128xf32>
      %15 = vector.broadcast %14 : vector<1x128xf32> to vector<16x128xf32>
      %16 = arith.addf %13, %15 : vector<16x128xf32>
      %cst_15 = arith.constant 0.000000e+00 : f32
      %17 = vector.broadcast %cst_15 : f32 to vector<16x128xf32>
      %18 = arith.cmpf ogt, %16, %17 : vector<16x128xf32>
      %cst_16 = arith.constant 0.00999999977 : f32
      %19 = vector.broadcast %cst_16 : f32 to vector<16x128xf32>
      %20 = arith.mulf %19, %16 : vector<16x128xf32>
      %21 = arith.select %18, %16, %20 : vector<16x128xi1>, vector<16x128xf32>
      %22 = arith.truncf %21 : vector<16x128xf32> to vector<16x128xbf16>
      %c0_17 = arith.constant 0 : index
      %c0_18 = arith.constant 0 : index
      %23 = vector.load %arg5[%c0_17, %c0_18] : memref<128x128xbf16, #tpu.memory_space<vmem>>, vector<128x128xbf16>
      %cst_19 = arith.constant dense<0.000000e+00> : vector<16x128xf32>
      %24 = tpu.matmul %22, %23, %cst_19 {dimension_numbers = #tpu.dot_dimension_numbers<[1], [0], [0], [1], [0, 0, 1, 1], [], []>} : vector<16x128xbf16>, vector<128x128xbf16>, vector<16x128xf32> -> vector<16x128xf32>
      %c0_20 = arith.constant 0 : index
      %c0_21 = arith.constant 0 : index
      %25 = vector.load %arg6[%c0_20, %c0_21] : memref<1x128xf32, #tpu.memory_space<vmem>>, vector<1x128xf32>
      %26 = vector.broadcast %25 : vector<1x128xf32> to vector<16x128xf32>
      %27 = arith.addf %24, %26 : vector<16x128xf32>
      %cst_22 = arith.constant 0.000000e+00 : f32
      %28 = vector.broadcast %cst_22 : f32 to vector<16x128xf32>
      %29 = arith.cmpf ogt, %27, %28 : vector<16x128xf32>
      %cst_23 = arith.constant 0.00999999977 : f32
      %30 = vector.broadcast %cst_23 : f32 to vector<16x128xf32>
      %31 = arith.mulf %30, %27 : vector<16x128xf32>
      %32 = arith.select %29, %27, %31 : vector<16x128xi1>, vector<16x128xf32>
      %33 = arith.addf %32, %10 : vector<16x128xf32>
      %34 = arith.truncf %33 : vector<16x128xf32> to vector<16x128xbf16>
      %c0_24 = arith.constant 0 : index
      %c0_25 = arith.constant 0 : index
      %35 = vector.load %arg10[%c0_24, %c0_25] : memref<16x128xbf16, #tpu.memory_space<vmem>>, vector<16x128xbf16>
      tpu.vector_store %arg10[%c0_24, %c0_25], %34 {strides = array<i32>} : memref<16x128xbf16, #tpu.memory_space<vmem>>, vector<16x128xbf16>,
    } else {
    }
    %c0 = arith.constant 0 : index
    %c0_1 = arith.constant 0 : index
    %3 = vector.load %arg10[%c0, %c0_1] : memref<16x128xbf16, #tpu.memory_space<vmem>>, vector<16x128xbf16>
    %c0_2 = arith.constant 0 : index
    %c0_3 = arith.constant 0 : index
    %4 = vector.load %arg7[%c0_2, %c0_3] : memref<128x128xbf16, #tpu.memory_space<vmem>>, vector<128x128xbf16>
    %cst = arith.constant dense<0.000000e+00> : vector<16x128xf32>
    %5 = tpu.matmul %3, %4, %cst {dimension_numbers = #tpu.dot_dimension_numbers<[1], [0], [0], [1], [0, 0, 1, 1], [], []>} : vector<16x128xbf16>, vector<128x128xbf16>, vector<16x128xf32> -> vector<16x128xf32>
    %c0_4 = arith.constant 0 : index
    %c0_5 = arith.constant 0 : index
    %6 = vector.load %arg8[%c0_4, %c0_5] : memref<1x128xf32, #tpu.memory_space<vmem>>, vector<1x128xf32>
    %7 = vector.broadcast %6 : vector<1x128xf32> to vector<16x128xf32>
    %8 = arith.addf %5, %7 : vector<16x128xf32>
    %c0_6 = arith.constant 0 : index
    %c0_7 = arith.constant 0 : index
    %9 = vector.load %arg9[%c0_6, %c0_7] : memref<16x128xf32, #tpu.memory_space<vmem>>, vector<16x128xf32>
    tpu.vector_store %arg9[%c0_6, %c0_7], %8 {strides = array<i32>} : memref<16x128xf32, #tpu.memory_space<vmem>>, vector<16x128xf32>,
    return
  }
  func.func @transform_0(%arg0: i32, %arg1: i32) -> (i32, i32) {
    %c0_i32 = arith.constant 0 : i32
    %c0_i32_0 = arith.constant 0 : i32
    return %arg0, %c0_i32 : i32, i32
  }
  func.func @transform_1(%arg0: i32, %arg1: i32) -> (i32, i32) {
    %c0_i32 = arith.constant 0 : i32
    %c0_i32_0 = arith.constant 0 : i32
    %c0_i32_1 = arith.constant 0 : i32
    return %c0_i32, %c0_i32_0 : i32, i32
  }
  func.func @transform_2(%arg0: i32, %arg1: i32) -> (i32, i32) {
    %c0_i32 = arith.constant 0 : i32
    %c0_i32_0 = arith.constant 0 : i32
    %c0_i32_1 = arith.constant 0 : i32
    return %c0_i32, %c0_i32_0 : i32, i32
  }
  func.func @transform_3(%arg0: i32, %arg1: i32) -> (i32, i32) {
    %c0_i32 = arith.constant 0 : i32
    %c0_i32_0 = arith.constant 0 : i32
    %c0_i32_1 = arith.constant 0 : i32
    return %c0_i32, %c0_i32_0 : i32, i32
  }
  func.func @transform_4(%arg0: i32, %arg1: i32) -> (i32, i32) {
    %c0_i32 = arith.constant 0 : i32
    %c0_i32_0 = arith.constant 0 : i32
    %c0_i32_1 = arith.constant 0 : i32
    return %c0_i32, %c0_i32_0 : i32, i32
  }
  func.func @transform_5(%arg0: i32, %arg1: i32) -> (i32, i32) {
    %c0_i32 = arith.constant 0 : i32
    %c0_i32_0 = arith.constant 0 : i32
    return %c0_i32, %arg1 : i32, i32
  }
  func.func @transform_6(%arg0: i32, %arg1: i32) -> (i32, i32) {
    %c0_i32 = arith.constant 0 : i32
    %c0_i32_0 = arith.constant 0 : i32
    return %c0_i32, %arg1 : i32, i32
  }
  func.func @transform_7(%arg0: i32, %arg1: i32) -> (i32, i32) {
    %c0_i32 = arith.constant 0 : i32
    return %arg0, %arg1 : i32, i32
  }
}

</mosaic_0001>

<bundles_post_ra>
// kernel: tpu_custom_call.1
= control target key start
LH: loop header
LB: loop body
LE: loop exit
PB: predicated region body
PF: predicated region fallthrough
CT: control target
= control target key end

     0   :  { %12 = vsyncpa [#allocation4], 0  ;;  %s912_s0 = inlined_call_operand.hbm [shape: f32[16,128], index: 0, kind: input, shape index: {}]   ;;  %s913_s1 = inlined_call_operand.hbm [shape: bf16[128,128], index: 1, kind: input, shape index: {}]   ;;  %s914_s2 = inlined_call_operand.vmem [shape: f32[1,128], index: 2, kind: input, shape index: {}]   ;;  %s915_s3 = inlined_call_operand.hbm [shape: bf16[128,128], index: 3, kind: input, shape index: {}]   ;;  %s916_s4 = inlined_call_operand.vmem [shape: f32[1,128], index: 4, kind: input, shape index: {}]   ;;  %s917_s5 = inlined_call_operand.hbm [shape: bf16[128,128], index: 5, kind: input, shape index: {}]   ;;  %s918_s6 = inlined_call_operand.vmem [shape: f32[1,128], index: 6, kind: input, shape index: {}]   ;;  %s919_s7 = inlined_call_operand.hbm [shape: f32[16,128], index: 7, kind: output, shape index: {}]  }
   0x1   :  { %13 = vsyncpa [#allocation7], 0 }
   0x2   :  { %14 = vsyncpa [#allocation10], 0 }
   0x3   :  { %15 = vsyncpa [#allocation5], 0  ;;  %s732_s24 = smov [#allocation6]   ;;  %s614_s28 = scalar_lea.hbm %s913_s1, 1024 }
   0x4   :  { %s33_s25 = sshll.u32 %s732_s24, 4  ;;  %p615_p0 = scmp.ne.s32.totalorder %s913_s1, %s614_s28  ;;  %s34_s25 = int_to_ptr.vmem [resolvable:$true] %s33_s25 }
   0x5   :  { %p618_p1 = scmp.lt.u32.totalorder %s614_s28, %s913_s1 }
   0x7   :  { %p620_p2 = pnand %p618_p1, %p615_p0 }
   0x9   :  { %623 = shalt.err (!%p620_p2)
}
   0xa   :  { %s624_s10 = scalar_lea.vmem %s34_s25, 1024  ;;  %p629_p4 = scmp.lt.s32.totalorder %s34_s25, %s34_s25 }
   0xb   :  { %p625_p3 = scmp.ne.s32.totalorder %s34_s25, %s624_s10  ;;  %p630_p5 = scmp.lt.s32.totalorder %s624_s10, %s624_s10 }
   0xd   :  { %p631_p6 = por %p630_p5, %p629_p4 }
   0xf   :  { %p632_p7 = pnand %p631_p6, %p625_p3 }
  0x11   :  { %635 = shalt.err (!%p632_p7)
}
  0x12   :  { %s733_s11 = smov 64   ;;  %s734_s12 = smov 4  }
  0x13   :  { %39 = dma.hbm_to_vmem [thread:$0]  %s913_s1, 1024, %s34_s25, [#allocation7], %s733_s11, %s733_s11, %s734_s12  }
  0x14   :  { %s735_s15 = smov [#allocation3]   ;;  %s636_s19 = scalar_lea.hbm %s912_s0, 256 }
  0x15   :  { %s21_s16 = sshll.u32 %s735_s15, 4  ;;  %p637_p8 = scmp.ne.s32.totalorder %s912_s0, %s636_s19  ;;  %s22_s16 = int_to_ptr.vmem [resolvable:$true] %s21_s16 }
  0x16   :  { %p640_p9 = scmp.lt.u32.totalorder %s636_s19, %s912_s0 }
  0x18   :  { %p642_p10 = pnand %p640_p9, %p637_p8 }
  0x1a   :  { %645 = shalt.err (!%p642_p10)
}
  0x1b   :  { %s646_s24 = scalar_lea.vmem %s22_s16, 256  ;;  %p651_p12 = scmp.lt.s32.totalorder %s22_s16, %s22_s16 }
  0x1c   :  { %p647_p11 = scmp.ne.s32.totalorder %s22_s16, %s646_s24  ;;  %p652_p13 = scmp.lt.s32.totalorder %s646_s24, %s646_s24 }
  0x1e   :  { %p653_p0 = por %p652_p13, %p651_p12 }
  0x20   :  { %p654_p1 = pnand %p653_p0, %p647_p11 }
  0x22   :  { %657 = shalt.err (!%p654_p1)
}
  0x23   :  { %s736_s1 = smov 128   ;;  %s737_s25 = smov 8  }
  0x24   :  { %27 = dma.hbm_to_vmem [thread:$0]  %s912_s0, 256, %s22_s16, [#allocation4], %s736_s1, %s736_s1, %s737_s25  }
  0x25   :  { %s738_s28 = smov [#allocation8]   ;;  %s739_s30 = smov [#allocation9]  }
  0x26   :  { %s47_s29 = sshll.u32 %s738_s28, 4  ;;  %s61_s8 = sshll.u32 %s739_s30, 4  ;;  %s48_s29 = int_to_ptr.vmem [resolvable:$true] %s47_s29  ;;  %s813_s8 = int_to_ptr.vmem [resolvable:$true] %s61_s8 }
  0x27   :  { %s658_s13 = scalar_lea.hbm %s915_s3, 1024 }
  0x28   :  { %p659_p2 = scmp.ne.s32.totalorder %s915_s3, %s658_s13  ;;  %p662_p3 = scmp.lt.u32.totalorder %s658_s13, %s915_s3 }
  0x2a   :  { %p664_p4 = pnand %p662_p3, %p659_p2 }
  0x2c   :  { %667 = shalt.err (!%p664_p4)
}
  0x2d   :  { %s668_s0 = scalar_lea.vmem %s48_s29, 1024  ;;  %p673_p6 = scmp.lt.s32.totalorder %s48_s29, %s48_s29 }
  0x2e   :  { %p669_p5 = scmp.ne.s32.totalorder %s48_s29, %s668_s0  ;;  %p674_p7 = scmp.lt.s32.totalorder %s668_s0, %s668_s0 }
  0x30   :  { %p675_p8 = por %p674_p7, %p673_p6 }
  0x32   :  { %p676_p9 = pnand %p675_p8, %p669_p5 }
  0x34   :  { %679 = shalt.err (!%p676_p9)
}
  0x35   :  { %53 = dma.hbm_to_vmem [thread:$0]  %s915_s3, 1024, %s48_s29, [#allocation7], %s733_s11, %s733_s11, %s734_s12  }
  0x36   :  { %s680_s22 = scalar_lea.hbm %s917_s5, 1024 }
  0x37   :  { %p681_p10 = scmp.ne.s32.totalorder %s917_s5, %s680_s22  ;;  %p684_p11 = scmp.lt.u32.totalorder %s680_s22, %s917_s5 }
  0x39   :  { %p686_p12 = pnand %p684_p11, %p681_p10 }
  0x3b   :  { %689 = shalt.err (!%p686_p12)
}
  0x3c   :  { %s690_s28 = scalar_lea.vmem %s813_s8, 1024  ;;  %p695_p0 = scmp.lt.s32.totalorder %s813_s8, %s813_s8 }
  0x3d   :  { %p691_p13 = scmp.ne.s32.totalorder %s813_s8, %s690_s28  ;;  %p696_p1 = scmp.lt.s32.totalorder %s690_s28, %s690_s28 }
  0x3f   :  { %p697_p2 = por %p696_p1, %p695_p0 }
  0x41   :  { %p698_p3 = pnand %p697_p2, %p691_p13 }
  0x43   :  { %701 = shalt.err (!%p698_p3)
}
  0x44   :  { %67 = dma.hbm_to_vmem [thread:$0]  %s917_s5, 1024, %s813_s8, [#allocation10], %s733_s11, %s733_s11, %s734_s12  }
  0x45   :  { %724 = dma.done.wait [#allocation4], 256  }
  0x46   :  { %725 = vsyncadd [#allocation4], 4294967040 }
  0x47   :  { %726 = dma.done.wait [#allocation7], 2048  }
  0x48   :  { %727 = vsyncadd [#allocation7], 4294965248 }
  0x49   :  { %728 = dma.done.wait [#allocation10], 1024  }
  0x4a   :  { %729 = vsyncadd [#allocation10], 4294966272  ;;  %v740_v0 = vmov 0.0   ;;  %vm741_vm0 = vmmov 0   ;;  %v590_v1 = vld [vmem:[#allocation6] sm:$0xff]   ;;  %v591_v2 = vld [vmem:[#allocation6 + $0x8] sm:$0xff]  }
  0x4b   :  { %519 = vmatprep.subr.bf16.mxu0 %v740_v0  ;;  %535 = vmatprep.mubr.msk.bf16.mxu0 %vm741_vm0, %v740_v0  ;;  %v592_v3 = vld [vmem:[#allocation6 + $0x10] sm:$0xff]   ;;  %v598_v4 = vld [vmem:[#allocation8] sm:$0xff]   ;;  %v593_v5 = vld [vmem:[#allocation6 + $0x18] sm:$0xff]   ;;  %s742_s8 = smov [#allocation11]  }
  0x4c   :  { %539 = vmatprep.subr.bf16.mxu1 %v740_v0  ;;  %555 = vmatprep.mubr.msk.bf16.mxu1 %vm741_vm0, %v740_v0  ;;  %v599_v6 = vld [vmem:[#allocation8 + $0x8] sm:$0xff]   ;;  %v594_v7 = vld [vmem:[#allocation6 + $0x20] sm:$0xff]   ;;  %v600_v8 = vld [vmem:[#allocation8 + $0x10] sm:$0xff]   ;;  %s451_s9 = sshll.u32 %s742_s8, 4  ;;  %s452_s9 = int_to_ptr.vmem [resolvable:$true] %s451_s9 }
  0x4d   :  { %520 = vmatpush3.bf16.msra.mxu0 %v590_v1  ;;  %540 = vmatpush3.bf16.msra.mxu1 %v598_v4  ;;  %v595_v9 = vld [vmem:[#allocation6 + $0x28] sm:$0xff]   ;;  %v601_v10 = vld [vmem:[#allocation8 + $0x18] sm:$0xff]   ;;  %v596_v11 = vld [vmem:[#allocation6 + $0x30] sm:$0xff]   ;;  %s702_s10 = scalar_lea.vmem %s452_s9, 256  ;;  %p707_p5 = scmp.lt.s32.totalorder %s452_s9, %s452_s9 }
  0x4e   :  { %521 = vmatprep.subr.bf16.mxu0 %v740_v0  ;;  %541 = vmatprep.subr.bf16.mxu1 %v740_v0  ;;  %v602_v12 = vld [vmem:[#allocation8 + $0x20] sm:$0xff]   ;;  %v597_v13 = vld [vmem:[#allocation6 + $0x38] sm:$0xff]   ;;  %v866_v14 = vld [vmem:[#allocation3] sm:$0xff]  ;;  %p703_p4 = scmp.ne.s32.totalorder %s452_s9, %s702_s10  ;;  %p708_p6 = scmp.lt.s32.totalorder %s702_s10, %s702_s10 }
  0x4f   :  { %v868_v15 = vld [vmem:[#allocation3 + $0x8] sm:$0xff]  ;;  %v603_v16 = vld [vmem:[#allocation8 + $0x28] sm:$0xff]   ;;  %v604_v18 = vld [vmem:[#allocation8 + $0x30] sm:$0xff]  }
  0x50   :  { %v89_v17 = vpack.c.bf16 %v868_v15, %v866_v14  ;;  %v605_v19 = vld [vmem:[#allocation8 + $0x38] sm:$0xff]   ;;  %v606_v20 = vld [vmem:[#allocation9] sm:$0xff]   ;;  %v607_v21 = vld [vmem:[#allocation9 + $0x8] sm:$0xff]   ;;  %p709_p7 = por %p708_p6, %p707_p5 }
  0x51   :  { %522 = vmatpush3.bf16.msra.mxu0 %v591_v2  ;;  %542 = vmatpush3.bf16.msra.mxu1 %v599_v6  ;;  %v608_v22 = vld [vmem:[#allocation9 + $0x10] sm:$0xff]   ;;  %v609_v23 = vld [vmem:[#allocation9 + $0x18] sm:$0xff]   ;;  %v610_v24 = vld [vmem:[#allocation9 + $0x20] sm:$0xff]  }
  0x52   :  { %523 = vmatprep.subr.bf16.mxu0 %v740_v0  ;;  %543 = vmatprep.subr.bf16.mxu1 %v740_v0  ;;  %v465_v25 = vld [vmem:[%s914_s2] ss:$0 sm:$0xff]  ;;  %v611_v37 = vld [vmem:[#allocation9 + $0x28] sm:$0xff]   ;;  %v613_v39 = vld [vmem:[#allocation9 + $0x38] sm:$0xff]   ;;  %p710_p8 = pnand %p709_p7, %p703_p4 }
  0x53   :  { %v612_v38 = vld [vmem:[#allocation9 + $0x30] sm:$0xff]  }
  0x54   :  { %v474_v40 = vld [vmem:[%s916_s4] ss:$0 sm:$0xff] }
  0x55   :  { %524 = vmatpush3.bf16.msra.mxu0 %v592_v3  ;;  %544 = vmatpush3.bf16.msra.mxu1 %v600_v8  ;;  %v483_v54 = vld [vmem:[%s918_s6] ss:$0 sm:$0xff] }
  0x56   :  { %525 = vmatprep.subr.bf16.mxu0 %v740_v0  ;;  %545 = vmatprep.subr.bf16.mxu1 %v740_v0 }
  0x59   :  { %526 = vmatpush3.bf16.msra.mxu0 %v593_v5  ;;  %546 = vmatpush3.bf16.msra.mxu1 %v601_v10 }
  0x5a   :  { %527 = vmatprep.subr.bf16.mxu0 %v740_v0  ;;  %547 = vmatprep.subr.bf16.mxu1 %v740_v0 }
  0x5d   :  { %528 = vmatpush3.bf16.msra.mxu0 %v594_v7  ;;  %548 = vmatpush3.bf16.msra.mxu1 %v602_v12 }
  0x5e   :  { %529 = vmatprep.subr.bf16.mxu0 %v740_v0  ;;  %549 = vmatprep.subr.bf16.mxu1 %v740_v0 }
  0x61   :  { %530 = vmatpush3.bf16.msra.mxu0 %v595_v9  ;;  %550 = vmatpush3.bf16.msra.mxu1 %v603_v16 }
  0x62   :  { %531 = vmatprep.subr.bf16.mxu0 %v740_v0  ;;  %551 = vmatprep.subr.bf16.mxu1 %v740_v0 }
  0x65   :  { %532 = vmatpush3.bf16.msra.mxu0 %v596_v11  ;;  %552 = vmatpush3.bf16.msra.mxu1 %v604_v18 }
  0x66   :  { %533 = vmatprep.subr.bf16.mxu0 %v740_v0  ;;  %553 = vmatprep.subr.bf16.mxu1 %v740_v0 }
  0x69   :  { %534 = vmatpush3.bf16.msra.mxu0 %v597_v13  ;;  %554 = vmatpush3.bf16.msra.mxu1 %v605_v19 }
  0x6a   :  { %559 = vmatprep.subr.bf16.mxu0 %v740_v0 }
  0x6c   :  { %536 = vmatmul.mubr.bf16.vlgmr.msra.gmra.mrb[0].mxu0 %v89_v17 }
  0x6d   :  { %575 = vmatprep.mubr.msk.bf16.mxu0 %vm741_vm0, %v740_v0  ;;  %560 = vmatpush3.bf16.msra.mxu0 %v606_v20 }
  0x6e   :  { %561 = vmatprep.subr.bf16.mxu0 %v740_v0 }
  0x71   :  { %562 = vmatpush3.bf16.msra.mxu0 %v607_v21 }
  0x72   :  { %563 = vmatprep.subr.bf16.mxu0 %v740_v0 }
  0x75   :  { %564 = vmatpush3.bf16.msra.mxu0 %v608_v22 }
  0x76   :  { %565 = vmatprep.subr.bf16.mxu0 %v740_v0 }
  0x79   :  { %566 = vmatpush3.bf16.msra.mxu0 %v609_v23 }
  0x7a   :  { %567 = vmatprep.subr.bf16.mxu0 %v740_v0 }
  0x7d   :  { %568 = vmatpush3.bf16.msra.mxu0 %v610_v24 }
  0x7e   :  { %569 = vmatprep.subr.bf16.mxu0 %v740_v0 }
  0x81   :  { %570 = vmatpush3.bf16.msra.mxu0 %v611_v37 }
  0x82   :  { %571 = vmatprep.subr.bf16.mxu0 %v740_v0 }
  0x85   :  { %572 = vmatpush3.bf16.msra.mxu0 %v612_v38 }
  0x86   :  { %573 = vmatprep.subr.bf16.mxu0 %v740_v0 }
  0x89   :  { %574 = vmatpush3.bf16.msra.mxu0 %v613_v39 }
 0x13f   :  { %v195_v26 = vpop.f32.mrb[0].mxu0 }
 0x140   :  { %v196_v27 = vadd.f32 %v465_v25, %v195_v26  ;;  %v537_v28 = vpop.f32.mrb[1].mxu0 }
 0x141   :  { %v198_v29 = vpop.f32.mrb[2].mxu0 }
 0x142   :  { %v204_v30 = vmul.f32 0.01, %v196_v27  ;;  %v199_v31 = vadd.f32 %v465_v25, %v198_v29  ;;  %v538_v32 = vpop.f32.mrb[3].mxu0  ;;  %vm202_vm1 = vcmp.gt.f32.partialorder %v196_v27, 0.0 }
 0x144   :  { %vm203_vm2 = vcmp.gt.f32.partialorder %v199_v31, 0.0  ;;  %v205_v33 = vmul.f32 0.01, %v199_v31  ;;  %v206_v34 = vsel %vm202_vm1, %v196_v27, %v204_v30 }
 0x146   :  { %v207_v35 = vsel %vm203_vm2, %v199_v31, %v205_v33 }
 0x147   :  { %v208_v36 = vpack.c.bf16 %v207_v35, %v206_v34 }
 0x149   :  { %556 = vmatmul.mubr.bf16.vlgmr.msra.gmra.mrb[0].mxu1 %v208_v36 }
 0x21c   :  { %v314_v41 = vpop.f32.mrb[0].mxu1 }
 0x21d   :  { %v315_v42 = vadd.f32 %v474_v40, %v314_v41  ;;  %v557_v43 = vpop.f32.mrb[1].mxu1 }
 0x21e   :  { %v317_v44 = vpop.f32.mrb[2].mxu1 }
 0x21f   :  { %vm321_vm3 = vcmp.gt.f32.partialorder %v315_v42, 0.0  ;;  %v323_v45 = vmul.f32 0.01, %v315_v42  ;;  %v318_v46 = vadd.f32 %v474_v40, %v317_v44  ;;  %v558_v47 = vpop.f32.mrb[3].mxu1 }
 0x221   :  { %v325_v48 = vsel %vm321_vm3, %v315_v42, %v323_v45  ;;  %vm322_vm4 = vcmp.gt.f32.partialorder %v318_v46, 0.0  ;;  %v324_v49 = vmul.f32 0.01, %v318_v46 }
 0x222   :  { %v327_v51 = vadd.f32 %v325_v48, %v866_v14 }
 0x223   :  { %v326_v50 = vsel %vm322_vm4, %v318_v46, %v324_v49 }
 0x224   :  { %v328_v52 = vadd.f32 %v326_v50, %v868_v15 }
 0x226   :  { %v329_v53 = vpack.c.bf16 %v328_v52, %v327_v51 }
 0x228   :  { %576 = vmatmul.mubr.bf16.vlgmr.msra.gmra.mrb[4].mxu0 %v329_v53 }
 0x2fb   :  { %v437_v55 = vpop.f32.mrb[4].mxu0 }
 0x2fc   :  { %v438_v56 = vadd.f32 %v483_v54, %v437_v55  ;;  %v577_v57 = vpop.f32.mrb[5].mxu0 }
 0x2fd   :  { %v440_v58 = vpop.f32.mrb[6].mxu0 }
 0x2fe   :  { %444 = vst [vmem:[#allocation11] sm:$0xff] %v438_v56  ;;  %v441_v59 = vadd.f32 %v483_v54, %v440_v58  ;;  %v578_v60 = vpop.f32.mrb[7].mxu0 }
 0x300   :  { %445 = vst [vmem:[#allocation11 + $0x8] sm:$0xff] %v441_v59 }
 0x301   :  { %713 = shalt.err (!%p710_p8)
}
 0x302   :  { %s714_s14 = scalar_lea.hbm %s919_s7, 256 }
 0x303   :  { %p715_p9 = scmp.ne.s32.totalorder %s919_s7, %s714_s14  ;;  %p718_p10 = scmp.lt.u32.totalorder %s714_s14, %s919_s7 }
 0x305   :  { %p720_p11 = pnand %p718_p10, %p715_p9 }
 0x307   :  { %723 = shalt.err (!%p720_p11)
}
 0x308   :  { %457 = dma.vmem_to_hbm [thread:$0]  %s452_s9, 256, %s919_s7, [#allocation5], %s736_s1, %s736_s1, %s737_s25  }
 0x309   :  { %730 = dma.done.wait [#allocation5], 256  }
 0x30a   :  { %731 = vsyncadd [#allocation5], 4294967040 }
 0x30b   :  { %461 = vsyncpa [#allocation4], 1 }
 0x30c   :  { %462 = vsyncpa [#allocation7], 1 }
 0x30d   :  { %463 = vsyncpa [#allocation10], 1 }
 0x30e   :  { %464 = vsyncpa [#allocation5], 1 }

// kernel: tpu_custom_call.1
= control target key start
LH: loop header
LB: loop body
LE: loop exit
PB: predicated region body
PF: predicated region fallthrough
CT: control target
= control target key end

     0   :  { %12 = vsyncpa [#allocation4], 0  ;;  %s912_s0 = inlined_call_operand.hbm [shape: f32[16,128], index: 0, kind: input, shape index: {}]   ;;  %s913_s1 = inlined_call_operand.hbm [shape: bf16[128,128], index: 1, kind: input, shape index: {}]   ;;  %s914_s2 = inlined_call_operand.vmem [shape: f32[1,128], index: 2, kind: input, shape index: {}]   ;;  %s915_s3 = inlined_call_operand.hbm [shape: bf16[128,128], index: 3, kind: input, shape index: {}]   ;;  %s916_s4 = inlined_call_operand.vmem [shape: f32[1,128], index: 4, kind: input, shape index: {}]   ;;  %s917_s5 = inlined_call_operand.hbm [shape: bf16[128,128], index: 5, kind: input, shape index: {}]   ;;  %s918_s6 = inlined_call_operand.vmem [shape: f32[1,128], index: 6, kind: input, shape index: {}]   ;;  %s919_s7 = inlined_call_operand.hbm [shape: f32[16,128], index: 7, kind: output, shape index: {}]  }
   0x1   :  { %13 = vsyncpa [#allocation7], 0 }
   0x2   :  { %14 = vsyncpa [#allocation10], 0 }
   0x3   :  { %15 = vsyncpa [#allocation5], 0  ;;  %s732_s24 = smov [#allocation6]   ;;  %s614_s28 = scalar_lea.hbm %s913_s1, 1024 }
   0x4   :  { %s33_s25 = sshll.u32 %s732_s24, 4  ;;  %p615_p0 = scmp.ne.s32.totalorder %s913_s1, %s614_s28  ;;  %s34_s25 = int_to_ptr.vmem [resolvable:$true] %s33_s25 }
   0x5   :  { %p618_p1 = scmp.lt.u32.totalorder %s614_s28, %s913_s1 }
   0x7   :  { %p620_p2 = pnand %p618_p1, %p615_p0 }
   0x9   :  { %623 = shalt.err (!%p620_p2)
}
   0xa   :  { %s624_s10 = scalar_lea.vmem %s34_s25, 1024  ;;  %p629_p4 = scmp.lt.s32.totalorder %s34_s25, %s34_s25 }
   0xb   :  { %p625_p3 = scmp.ne.s32.totalorder %s34_s25, %s624_s10  ;;  %p630_p5 = scmp.lt.s32.totalorder %s624_s10, %s624_s10 }
   0xd   :  { %p631_p6 = por %p630_p5, %p629_p4 }
   0xf   :  { %p632_p7 = pnand %p631_p6, %p625_p3 }
  0x11   :  { %635 = shalt.err (!%p632_p7)
}
  0x12   :  { %s733_s11 = smov 64   ;;  %s734_s12 = smov 4  }
  0x13   :  { %39 = dma.hbm_to_vmem [thread:$0]  %s913_s1, 1024, %s34_s25, [#allocation7], %s733_s11, %s733_s11, %s734_s12  }
  0x14   :  { %s735_s15 = smov [#allocation3]   ;;  %s636_s19 = scalar_lea.hbm %s912_s0, 256 }
  0x15   :  { %s21_s16 = sshll.u32 %s735_s15, 4  ;;  %p637_p8 = scmp.ne.s32.totalorder %s912_s0, %s636_s19  ;;  %s22_s16 = int_to_ptr.vmem [resolvable:$true] %s21_s16 }
  0x16   :  { %p640_p9 = scmp.lt.u32.totalorder %s636_s19, %s912_s0 }
  0x18   :  { %p642_p10 = pnand %p640_p9, %p637_p8 }
  0x1a   :  { %645 = shalt.err (!%p642_p10)
}
  0x1b   :  { %s646_s24 = scalar_lea.vmem %s22_s16, 256  ;;  %p651_p12 = scmp.lt.s32.totalorder %s22_s16, %s22_s16 }
  0x1c   :  { %p647_p11 = scmp.ne.s32.totalorder %s22_s16, %s646_s24  ;;  %p652_p13 = scmp.lt.s32.totalorder %s646_s24, %s646_s24 }
  0x1e   :  { %p653_p0 = por %p652_p13, %p651_p12 }
  0x20   :  { %p654_p1 = pnand %p653_p0, %p647_p11 }
  0x22   :  { %657 = shalt.err (!%p654_p1)
}
  0x23   :  { %s736_s1 = smov 128   ;;  %s737_s25 = smov 8  }
  0x24   :  { %27 = dma.hbm_to_vmem [thread:$0]  %s912_s0, 256, %s22_s16, [#allocation4], %s736_s1, %s736_s1, %s737_s25  }
  0x25   :  { %s738_s28 = smov [#allocation8]   ;;  %s739_s30 = smov [#allocation9]  }
  0x26   :  { %s47_s29 = sshll.u32 %s738_s28, 4  ;;  %s61_s8 = sshll.u32 %s739_s30, 4  ;;  %s48_s29 = int_to_ptr.vmem [resolvable:$true] %s47_s29  ;;  %s813_s8 = int_to_ptr.vmem [resolvable:$true] %s61_s8 }
  0x27   :  { %s658_s13 = scalar_lea.hbm %s915_s3, 1024 }
  0x28   :  { %p659_p2 = scmp.ne.s32.totalorder %s915_s3, %s658_s13  ;;  %p662_p3 = scmp.lt.u32.totalorder %s658_s13, %s915_s3 }
  0x2a   :  { %p664_p4 = pnand %p662_p3, %p659_p2 }
  0x2c   :  { %667 = shalt.err (!%p664_p4)
}
  0x2d   :  { %s668_s0 = scalar_lea.vmem %s48_s29, 1024  ;;  %p673_p6 = scmp.lt.s32.totalorder %s48_s29, %s48_s29 }
  0x2e   :  { %p669_p5 = scmp.ne.s32.totalorder %s48_s29, %s668_s0  ;;  %p674_p7 = scmp.lt.s32.totalorder %s668_s0, %s668_s0 }
  0x30   :  { %p675_p8 = por %p674_p7, %p673_p6 }
  0x32   :  { %p676_p9 = pnand %p675_p8, %p669_p5 }
  0x34   :  { %679 = shalt.err (!%p676_p9)
}
  0x35   :  { %53 = dma.hbm_to_vmem [thread:$0]  %s915_s3, 1024, %s48_s29, [#allocation7], %s733_s11, %s733_s11, %s734_s12  }
  0x36   :  { %s680_s22 = scalar_lea.hbm %s917_s5, 1024 }
  0x37   :  { %p681_p10 = scmp.ne.s32.totalorder %s917_s5, %s680_s22  ;;  %p684_p11 = scmp.lt.u32.totalorder %s680_s22, %s917_s5 }
  0x39   :  { %p686_p12 = pnand %p684_p11, %p681_p10 }
  0x3b   :  { %689 = shalt.err (!%p686_p12)
}
  0x3c   :  { %s690_s28 = scalar_lea.vmem %s813_s8, 1024  ;;  %p695_p0 = scmp.lt.s32.totalorder %s813_s8, %s813_s8 }
  0x3d   :  { %p691_p13 = scmp.ne.s32.totalorder %s813_s8, %s690_s28  ;;  %p696_p1 = scmp.lt.s32.totalorder %s690_s28, %s690_s28 }
  0x3f   :  { %p697_p2 = por %p696_p1, %p695_p0 }
  0x41   :  { %p698_p3 = pnand %p697_p2, %p691_p13 }
  0x43   :  { %701 = shalt.err (!%p698_p3)
}
  0x44   :  { %67 = dma.hbm_to_vmem [thread:$0]  %s917_s5, 1024, %s813_s8, [#allocation10], %s733_s11, %s733_s11, %s734_s12  }
  0x45   :  { %724 = dma.done.wait [#allocation4], 256  }
  0x46   :  { %725 = vsyncadd [#allocation4], 4294967040 }
  0x47   :  { %726 = dma.done.wait [#allocation7], 2048  }
  0x48   :  { %727 = vsyncadd [#allocation7], 4294965248 }
  0x49   :  { %728 = dma.done.wait [#allocation10], 1024  }
  0x4a   :  { %729 = vsyncadd [#allocation10], 4294966272  ;;  %v740_v0 = vmov 0.0   ;;  %vm741_vm0 = vmmov 0   ;;  %v590_v1 = vld [vmem:[#allocation6] sm:$0xff]   ;;  %v591_v2 = vld [vmem:[#allocation6 + $0x8] sm:$0xff]  }
  0x4b   :  { %519 = vmatprep.subr.bf16.mxu0 %v740_v0  ;;  %535 = vmatprep.mubr.msk.bf16.mxu0 %vm741_vm0, %v740_v0  ;;  %v592_v3 = vld [vmem:[#allocation6 + $0x10] sm:$0xff]   ;;  %v598_v4 = vld [vmem:[#allocation8] sm:$0xff]   ;;  %v593_v5 = vld [vmem:[#allocation6 + $0x18] sm:$0xff]   ;;  %s742_s8 = smov [#allocation11]  }
  0x4c   :  { %539 = vmatprep.subr.bf16.mxu1 %v740_v0  ;;  %555 = vmatprep.mubr.msk.bf16.mxu1 %vm741_vm0, %v740_v0  ;;  %v599_v6 = vld [vmem:[#allocation8 + $0x8] sm:$0xff]   ;;  %v594_v7 = vld [vmem:[#allocation6 + $0x20] sm:$0xff]   ;;  %v600_v8 = vld [vmem:[#allocation8 + $0x10] sm:$0xff]   ;;  %s451_s9 = sshll.u32 %s742_s8, 4  ;;  %s452_s9 = int_to_ptr.vmem [resolvable:$true] %s451_s9 }
  0x4d   :  { %520 = vmatpush3.bf16.msra.mxu0 %v590_v1  ;;  %540 = vmatpush3.bf16.msra.mxu1 %v598_v4  ;;  %v595_v9 = vld [vmem:[#allocation6 + $0x28] sm:$0xff]   ;;  %v601_v10 = vld [vmem:[#allocation8 + $0x18] sm:$0xff]   ;;  %v596_v11 = vld [vmem:[#allocation6 + $0x30] sm:$0xff]   ;;  %s702_s10 = scalar_lea.vmem %s452_s9, 256  ;;  %p707_p5 = scmp.lt.s32.totalorder %s452_s9, %s452_s9 }
  0x4e   :  { %521 = vmatprep.subr.bf16.mxu0 %v740_v0  ;;  %541 = vmatprep.subr.bf16.mxu1 %v740_v0  ;;  %v602_v12 = vld [vmem:[#allocation8 + $0x20] sm:$0xff]   ;;  %v597_v13 = vld [vmem:[#allocation6 + $0x38] sm:$0xff]   ;;  %v866_v14 = vld [vmem:[#allocation3] sm:$0xff]  ;;  %p703_p4 = scmp.ne.s32.totalorder %s452_s9, %s702_s10  ;;  %p708_p6 = scmp.lt.s32.totalorder %s702_s10, %s702_s10 }
  0x4f   :  { %v868_v15 = vld [vmem:[#allocation3 + $0x8] sm:$0xff]  ;;  %v603_v16 = vld [vmem:[#allocation8 + $0x28] sm:$0xff]   ;;  %v604_v18 = vld [vmem:[#allocation8 + $0x30] sm:$0xff]  }
  0x50   :  { %v89_v17 = vpack.c.bf16 %v868_v15, %v866_v14  ;;  %v605_v19 = vld [vmem:[#allocation8 + $0x38] sm:$0xff]   ;;  %v606_v20 = vld [vmem:[#allocation9] sm:$0xff]   ;;  %v607_v21 = vld [vmem:[#allocation9 + $0x8] sm:$0xff]   ;;  %p709_p7 = por %p708_p6, %p707_p5 }
  0x51   :  { %522 = vmatpush3.bf16.msra.mxu0 %v591_v2  ;;  %542 = vmatpush3.bf16.msra.mxu1 %v599_v6  ;;  %v608_v22 = vld [vmem:[#allocation9 + $0x10] sm:$0xff]   ;;  %v609_v23 = vld [vmem:[#allocation9 + $0x18] sm:$0xff]   ;;  %v610_v24 = vld [vmem:[#allocation9 + $0x20] sm:$0xff]  }
  0x52   :  { %523 = vmatprep.subr.bf16.mxu0 %v740_v0  ;;  %543 = vmatprep.subr.bf16.mxu1 %v740_v0  ;;  %v465_v25 = vld [vmem:[%s914_s2] ss:$0 sm:$0xff]  ;;  %v611_v37 = vld [vmem:[#allocation9 + $0x28] sm:$0xff]   ;;  %v613_v39 = vld [vmem:[#allocation9 + $0x38] sm:$0xff]   ;;  %p710_p8 = pnand %p709_p7, %p703_p4 }
  0x53   :  { %v612_v38 = vld [vmem:[#allocation9 + $0x30] sm:$0xff]  }
  0x54   :  { %v474_v40 = vld [vmem:[%s916_s4] ss:$0 sm:$0xff] }
  0x55   :  { %524 = vmatpush3.bf16.msra.mxu0 %v592_v3  ;;  %544 = vmatpush3.bf16.msra.mxu1 %v600_v8  ;;  %v483_v54 = vld [vmem:[%s918_s6] ss:$0 sm:$0xff] }
  0x56   :  { %525 = vmatprep.subr.bf16.mxu0 %v740_v0  ;;  %545 = vmatprep.subr.bf16.mxu1 %v740_v0 }
  0x59   :  { %526 = vmatpush3.bf16.msra.mxu0 %v593_v5  ;;  %546 = vmatpush3.bf16.msra.mxu1 %v601_v10 }
  0x5a   :  { %527 = vmatprep.subr.bf16.mxu0 %v740_v0  ;;  %547 = vmatprep.subr.bf16.mxu1 %v740_v0 }
  0x5d   :  { %528 = vmatpush3.bf16.msra.mxu0 %v594_v7  ;;  %548 = vmatpush3.bf16.msra.mxu1 %v602_v12 }
  0x5e   :  { %529 = vmatprep.subr.bf16.mxu0 %v740_v0  ;;  %549 = vmatprep.subr.bf16.mxu1 %v740_v0 }
  0x61   :  { %530 = vmatpush3.bf16.msra.mxu0 %v595_v9  ;;  %550 = vmatpush3.bf16.msra.mxu1 %v603_v16 }
  0x62   :  { %531 = vmatprep.subr.bf16.mxu0 %v740_v0  ;;  %551 = vmatprep.subr.bf16.mxu1 %v740_v0 }
  0x65   :  { %532 = vmatpush3.bf16.msra.mxu0 %v596_v11  ;;  %552 = vmatpush3.bf16.msra.mxu1 %v604_v18 }
  0x66   :  { %533 = vmatprep.subr.bf16.mxu0 %v740_v0  ;;  %553 = vmatprep.subr.bf16.mxu1 %v740_v0 }
  0x69   :  { %534 = vmatpush3.bf16.msra.mxu0 %v597_v13  ;;  %554 = vmatpush3.bf16.msra.mxu1 %v605_v19 }
  0x6a   :  { %559 = vmatprep.subr.bf16.mxu0 %v740_v0 }
  0x6c   :  { %536 = vmatmul.mubr.bf16.vlgmr.msra.gmra.mrb[0].mxu0 %v89_v17 }
  0x6d   :  { %575 = vmatprep.mubr.msk.bf16.mxu0 %vm741_vm0, %v740_v0  ;;  %560 = vmatpush3.bf16.msra.mxu0 %v606_v20 }
  0x6e   :  { %561 = vmatprep.subr.bf16.mxu0 %v740_v0 }
  0x71   :  { %562 = vmatpush3.bf16.msra.mxu0 %v607_v21 }
  0x72   :  { %563 = vmatprep.subr.bf16.mxu0 %v740_v0 }
  0x75   :  { %564 = vmatpush3.bf16.msra.mxu0 %v608_v22 }
  0x76   :  { %565 = vmatprep.subr.bf16.mxu0 %v740_v0 }
  0x79   :  { %566 = vmatpush3.bf16.msra.mxu0 %v609_v23 }
  0x7a   :  { %567 = vmatprep.subr.bf16.mxu0 %v740_v0 }
  0x7d   :  { %568 = vmatpush3.bf16.msra.mxu0 %v610_v24 }
  0x7e   :  { %569 = vmatprep.subr.bf16.mxu0 %v740_v0 }
  0x81   :  { %570 = vmatpush3.bf16.msra.mxu0 %v611_v37 }
  0x82   :  { %571 = vmatprep.subr.bf16.mxu0 %v740_v0 }
  0x85   :  { %572 = vmatpush3.bf16.msra.mxu0 %v612_v38 }
  0x86   :  { %573 = vmatprep.subr.bf16.mxu0 %v740_v0 }
  0x89   :  { %574 = vmatpush3.bf16.msra.mxu0 %v613_v39 }
 0x13f   :  { %v195_v26 = vpop.f32.mrb[0].mxu0 }
 0x140   :  { %v196_v27 = vadd.f32 %v465_v25, %v195_v26  ;;  %v537_v28 = vpop.f32.mrb[1].mxu0 }
 0x141   :  { %v198_v29 = vpop.f32.mrb[2].mxu0 }
 0x142   :  { %v204_v30 = vmul.f32 0.01, %v196_v27  ;;  %v199_v31 = vadd.f32 %v465_v25, %v198_v29  ;;  %v538_v32 = vpop.f32.mrb[3].mxu0  ;;  %vm202_vm1 = vcmp.gt.f32.partialorder %v196_v27, 0.0 }
 0x144   :  { %vm203_vm2 = vcmp.gt.f32.partialorder %v199_v31, 0.0  ;;  %v205_v33 = vmul.f32 0.01, %v199_v31  ;;  %v206_v34 = vsel %vm202_vm1, %v196_v27, %v204_v30 }
 0x146   :  { %v207_v35 = vsel %vm203_vm2, %v199_v31, %v205_v33 }
 0x147   :  { %v208_v36 = vpack.c.bf16 %v207_v35, %v206_v34 }
 0x149   :  { %556 = vmatmul.mubr.bf16.vlgmr.msra.gmra.mrb[0].mxu1 %v208_v36 }
 0x21c   :  { %v314_v41 = vpop.f32.mrb[0].mxu1 }
 0x21d   :  { %v315_v42 = vadd.f32 %v474_v40, %v314_v41  ;;  %v557_v43 = vpop.f32.mrb[1].mxu1 }
 0x21e   :  { %v317_v44 = vpop.f32.mrb[2].mxu1 }
 0x21f   :  { %vm321_vm3 = vcmp.gt.f32.partialorder %v315_v42, 0.0  ;;  %v323_v45 = vmul.f32 0.01, %v315_v42  ;;  %v318_v46 = vadd.f32 %v474_v40, %v317_v44  ;;  %v558_v47 = vpop.f32.mrb[3].mxu1 }
 0x221   :  { %v325_v48 = vsel %vm321_vm3, %v315_v42, %v323_v45  ;;  %vm322_vm4 = vcmp.gt.f32.partialorder %v318_v46, 0.0  ;;  %v324_v49 = vmul.f32 0.01, %v318_v46 }
 0x222   :  { %v327_v51 = vadd.f32 %v325_v48, %v866_v14 }
 0x223   :  { %v326_v50 = vsel %vm322_vm4, %v318_v46, %v324_v49 }
 0x224   :  { %v328_v52 = vadd.f32 %v326_v50, %v868_v15 }
 0x226   :  { %v329_v53 = vpack.c.bf16 %v328_v52, %v327_v51 }
 0x228   :  { %576 = vmatmul.mubr.bf16.vlgmr.msra.gmra.mrb[4].mxu0 %v329_v53 }
 0x2fb   :  { %v437_v55 = vpop.f32.mrb[4].mxu0 }
 0x2fc   :  { %v438_v56 = vadd.f32 %v483_v54, %v437_v55  ;;  %v577_v57 = vpop.f32.mrb[5].mxu0 }
 0x2fd   :  { %v440_v58 = vpop.f32.mrb[6].mxu0 }
 0x2fe   :  { %444 = vst [vmem:[#allocation11] sm:$0xff] %v438_v56  ;;  %v441_v59 = vadd.f32 %v483_v54, %v440_v58  ;;  %v578_v60 = vpop.f32.mrb[7].mxu0 }
 0x300   :  { %445 = vst [vmem:[#allocation11 + $0x8] sm:$0xff] %v441_v59 }
 0x301   :  { %713 = shalt.err (!%p710_p8)
}
 0x302   :  { %s714_s14 = scalar_lea.hbm %s919_s7, 256 }
 0x303   :  { %p715_p9 = scmp.ne.s32.totalorder %s919_s7, %s714_s14  ;;  %p718_p10 = scmp.lt.u32.totalorder %s714_s14, %s919_s7 }
 0x305   :  { %p720_p11 = pnand %p718_p10, %p715_p9 }
 0x307   :  { %723 = shalt.err (!%p720_p11)
}
 0x308   :  { %457 = dma.vmem_to_hbm [thread:$0]  %s452_s9, 256, %s919_s7, [#allocation5], %s736_s1, %s736_s1, %s737_s25  }
 0x309   :  { %730 = dma.done.wait [#allocation5], 256  }
 0x30a   :  { %731 = vsyncadd [#allocation5], 4294967040 }
 0x30b   :  { %461 = vsyncpa [#allocation4], 1 }
 0x30c   :  { %462 = vsyncpa [#allocation7], 1 }
 0x30d   :  { %463 = vsyncpa [#allocation10], 1 }
 0x30e   :  { %464 = vsyncpa [#allocation5], 1 }

</bundles_post_ra>
